<compile_context>
chip_gen: v7x
topology: tpu7x:2x2x1
jax: 0.10.0
libtpu: 0.0.40
codegen_flags: <defaults>
</compile_context>

<pallas_src>
import jax
import jax.numpy as jnp
import numpy as np
from jax.experimental import pallas as pl
from jax.experimental.pallas import tpu as pltpu

IN_FEATURES = 80
HIDDEN = 128
OUT_FEATURES = 16


def _round_up(x, m):
    return (x + m - 1) // m * m


def _fused_affine_kernel(x_ref, w_ref, b_ref, o_ref):
    # One MXU matmul per batch tile: (tile, 80) @ (80, 16) + (1, 16)
    y = jnp.dot(x_ref[...], w_ref[...], preferred_element_type=jnp.float32)
    o_ref[...] = (y + b_ref[...]).astype(o_ref.dtype)


def fuse_params(w1, b1, w2, b2):
    """Collapse Linear(80,128) -> Linear(128,16) into one affine map."""
    w = jnp.dot(w1, w2, preferred_element_type=jnp.float32)        # (80, 16)
    b = jnp.dot(b1, w2, preferred_element_type=jnp.float32) + b2   # (16,)
    return w, b


def enhanced_linear_gaussian_predictor(x, w1, b1, w2, b2, *,
                                       tile_n=2048, compute_dtype=None):
    """x: (N, 80) float32 -> (N, 16) float32.

    compute_dtype: optionally jnp.bfloat16 to halve x HBM traffic on v6e/v7x
    (accumulation stays f32). Default None keeps exact f32 semantics.

    Note: for tiny batches (a few rows) a plain XLA dot is already optimal and
    the Pallas launch is pure overhead; this kernel targets large-batch
    inference but remains correct for any N >= 1.
    """
    n = x.shape[0]
    w, b = fuse_params(w1, b1, w2, b2)
    b = b.reshape(1, OUT_FEATURES).astype(jnp.float32)

    if compute_dtype is not None:
        x = x.astype(compute_dtype)
        w = w.astype(compute_dtype)

    # Choose tile so that padding is bounded by < 8 rows per tile:
    #   num_tiles = ceil(N8 / tile_n), tile = round_up(N8 / num_tiles, 8).
    n8 = _round_up(max(n, 1), 8)                 # sublane alignment
    num_tiles = -(-n8 // tile_n)                 # ceil-div, static Python int
    tile = _round_up(-(-n8 // num_tiles), 8)
    n_pad = tile * num_tiles
    if n_pad != n:
        x = jnp.pad(x, ((0, n_pad - n), (0, 0)))

    x_bytes = jnp.dtype(x.dtype).itemsize
    cost = pl.CostEstimate(
        flops=2 * n_pad * IN_FEATURES * OUT_FEATURES,
        transcendentals=0,
        bytes_accessed=int(n_pad * (IN_FEATURES * x_bytes + OUT_FEATURES * 4)
                           + IN_FEATURES * OUT_FEATURES * x_bytes
                           + OUT_FEATURES * 4),
    )

    out = pl.pallas_call(
        _fused_affine_kernel,
        out_shape=jax.ShapeDtypeStruct((n_pad, OUT_FEATURES), jnp.float32),
        grid=(num_tiles,),
        in_specs=[
            # x: streamed tile-by-tile over the batch (double-buffered).
            pl.BlockSpec((tile, IN_FEATURES), lambda i: (i, 0)),
            # Fused weight / bias: constant block index -> resident in VMEM.
            pl.BlockSpec((IN_FEATURES, OUT_FEATURES), lambda i: (0, 0)),
            pl.BlockSpec((1, OUT_FEATURES), lambda i: (0, 0)),
        ],
        out_specs=pl.BlockSpec((tile, OUT_FEATURES), lambda i: (i, 0)),
        compiler_params=pltpu.CompilerParams(
            dimension_semantics=("parallel",),  # shard batch across TCs (v7x)
        ),
        cost_estimate=cost,
    )(x, w, b)

    return out[:n] if n_pad != n else out


def init_params(key):
    """Deterministic synthetic init mimicking PyTorch Linear default
    (uniform in +/- 1/sqrt(fan_in))."""
    k1, k2, k3, k4 = jax.random.split(key, 4)
    bound1 = 1.0 / np.sqrt(IN_FEATURES)
    bound2 = 1.0 / np.sqrt(HIDDEN)
    w1 = jax.random.uniform(k1, (IN_FEATURES, HIDDEN), jnp.float32, -bound1, bound1)
    b1 = jax.random.uniform(k2, (HIDDEN,), jnp.float32, -bound1, bound1)
    w2 = jax.random.uniform(k3, (HIDDEN, OUT_FEATURES), jnp.float32, -bound2, bound2)
    b2 = jax.random.uniform(k4, (OUT_FEATURES,), jnp.float32, -bound2, bound2)
    return w1, b1, w2, b2


if __name__ == "__main__":
    key = jax.random.PRNGKey(0)
    k_params, k_x = jax.random.split(key)
    w1, b1, w2, b2 = init_params(k_params)

    fwd = jax.jit(enhanced_linear_gaussian_predictor)

    # batch=64 hits the aligned path; batch=50 exercises the pad-to-sublane path.
    for batch in (64, 50):
        x = jax.random.normal(jax.random.fold_in(k_x, batch),
                              (batch, IN_FEATURES), jnp.float32)
        out = fwd(x, w1, b1, w2, b2)
        out = jax.block_until_ready(out)

        # Reference: the original un-fused two-Linear forward (PyTorch math).
        ref = (x @ w1 + b1) @ w2 + b2
        np.testing.assert_allclose(np.asarray(out), np.asarray(ref),
                                   rtol=1e-4, atol=1e-4)
        assert out.shape == (batch, OUT_FEATURES)

    print("KERNEL_OK")
</pallas_src>

<mosaic_0001>
module attributes {stable_mosaic.version = 11 : i64} {
  func.func @_fused_affine_kernel(%arg0: i32, %arg1: memref<64x80xf32, #tpu.memory_space<vmem>>, %arg2: memref<80x16xf32, #tpu.memory_space<vmem>>, %arg3: memref<1x16xf32, #tpu.memory_space<vmem>>, %arg4: memref<64x16xf32, #tpu.memory_space<vmem>>) attributes {dimension_semantics = [#tpu.dimension_semantics<parallel>], iteration_bounds = array<i64: 1>, scalar_prefetch = 0 : i64, scratch_operands = 0 : i64, tpu.core_type = #tpu.core_type<tc>, window_params = [{transform_indices = @transform_0, window_bounds = array<i64: 64, 80>}, {pipeline_mode = #tpu.pipeline_mode<synchronous>, transform_indices = @transform_1, window_bounds = array<i64: 80, 16>}, {pipeline_mode = #tpu.pipeline_mode<synchronous>, transform_indices = @transform_2, window_bounds = array<i64: 1, 16>}, {transform_indices = @transform_3, window_bounds = array<i64: 64, 16>}]} {
    %c0 = arith.constant 0 : index
    %c0_0 = arith.constant 0 : index
    %0 = vector.load %arg1[%c0, %c0_0] : memref<64x80xf32, #tpu.memory_space<vmem>>, vector<64x80xf32>
    %c0_1 = arith.constant 0 : index
    %c0_2 = arith.constant 0 : index
    %1 = vector.load %arg2[%c0_1, %c0_2] : memref<80x16xf32, #tpu.memory_space<vmem>>, vector<80x16xf32>
    %cst = arith.constant dense<0.000000e+00> : vector<64x16xf32>
    %2 = tpu.matmul %0, %1, %cst {dimension_numbers = #tpu.dot_dimension_numbers<[1], [0], [0], [1], [0, 0, 1, 1], [], []>} : vector<64x80xf32>, vector<80x16xf32>, vector<64x16xf32> -> vector<64x16xf32>
    %c0_3 = arith.constant 0 : index
    %c0_4 = arith.constant 0 : index
    %3 = vector.load %arg3[%c0_3, %c0_4] : memref<1x16xf32, #tpu.memory_space<vmem>>, vector<1x16xf32>
    %4 = vector.broadcast %3 : vector<1x16xf32> to vector<64x16xf32>
    %5 = arith.addf %2, %4 : vector<64x16xf32>
    %c0_5 = arith.constant 0 : index
    %c0_6 = arith.constant 0 : index
    %6 = vector.load %arg4[%c0_5, %c0_6] : memref<64x16xf32, #tpu.memory_space<vmem>>, vector<64x16xf32>
    tpu.vector_store %arg4[%c0_5, %c0_6], %5 {strides = array<i32>} : memref<64x16xf32, #tpu.memory_space<vmem>>, vector<64x16xf32>,
    return
  }
  func.func @transform_0(%arg0: i32) -> (i32, i32) {
    %c0_i32 = arith.constant 0 : i32
    %c0_i32_0 = arith.constant 0 : i32
    return %arg0, %c0_i32 : i32, i32
  }
  func.func @transform_1(%arg0: i32) -> (i32, i32) {
    %c0_i32 = arith.constant 0 : i32
    %c0_i32_0 = arith.constant 0 : i32
    %c0_i32_1 = arith.constant 0 : i32
    return %c0_i32, %c0_i32_0 : i32, i32
  }
  func.func @transform_2(%arg0: i32) -> (i32, i32) {
    %c0_i32 = arith.constant 0 : i32
    %c0_i32_0 = arith.constant 0 : i32
    %c0_i32_1 = arith.constant 0 : i32
    return %c0_i32, %c0_i32_0 : i32, i32
  }
  func.func @transform_3(%arg0: i32) -> (i32, i32) {
    %c0_i32 = arith.constant 0 : i32
    %c0_i32_0 = arith.constant 0 : i32
    return %arg0, %c0_i32 : i32, i32
  }
}

</mosaic_0001>

<bundles_post_ra>
// kernel: enhanced_linear_gaussian_predictor.1
= control target key start
LH: loop header
LB: loop body
LE: loop exit
PB: predicated region body
PF: predicated region fallthrough
CT: control target
= control target key end

     0   :  { %vm39_vm0 = vcmask 654336   ;;  %vm169_vm1 = vcmask 130048   ;;  %s388_s1 = inlined_call_operand.vmem [shape: f32[80,16], index: 1, kind: input, shape index: {}]   ;;  %s389_s0 = inlined_call_operand.vmem [shape: f32[64,80], index: 0, kind: input, shape index: {}]   ;;  %s390_s2 = inlined_call_operand.vmem [shape: f32[1,16], index: 2, kind: input, shape index: {}]   ;;  %s391_s3 = inlined_call_operand.vmem [shape: f32[64,16], index: 3, kind: output, shape index: {}]  }
   0x1   :  { %v22_v0 = vld [vmem:[%s388_s1] sm:$0xff]  ;;  %v23_v1 = vld [vmem:[%s388_s1 + $0x8] sm:$0xff]  ;;  %v24_v2 = vld [vmem:[%s388_s1 + $0x10] sm:$0xff] }
   0x2   :  { %v241_v3 = vpack.c.bf16 %v23_v1, %v22_v0  ;;  %v25_v4 = vld [vmem:[%s388_s1 + $0x18] sm:$0xff]  ;;  %v26_v6 = vld [vmem:[%s388_s1 + $0x20] sm:$0xff]  ;;  %v27_v7 = vld [vmem:[%s388_s1 + $0x28] sm:$0xff] }
   0x3   :  { %v245_v5 = vpack.c.bf16 %v25_v4, %v24_v2  ;;  %v14_v8 = vld [vmem:[%s389_s0] sm:$0xff]  ;;  %v249_v10 = vpack.c.bf16 %v27_v7, %v26_v6  ;;  %v28_v11 = vld [vmem:[%s388_s1 + $0x30] sm:$0xff]  ;;  %v29_v12 = vld [vmem:[%s388_s1 + $0x38] sm:$0xff] }
   0x4   :  { %242 = vmatprep.subr.bf16.mxu0 %v241_v3  ;;  %261 = vmatprep.subr.bf16.mxu1 %v241_v3  ;;  %v18_v9 = vld [vmem:[%s389_s0 + $0x20] sm:$0xff]  ;;  %v253_v13 = vpack.c.bf16 %v29_v12, %v28_v11  ;;  %v31_v15 = vld [vmem:[%s388_s1 + $0x48] sm:$0xff]  ;;  %v16_v19 = vld [vmem:[%s389_s0 + $0x10] sm:$0xff] }
   0x5   :  { %244 = vmatpush3.bf16.msra.mxu0 %v241_v3  ;;  %266 = vmatpush3.bf16.msra.mxu1 %v241_v3  ;;  %v30_v14 = vld [vmem:[%s388_s1 + $0x40] sm:$0xff]  ;;  %v15_v17 = vld [vmem:[%s389_s0 + $0x8] sm:$0xff]  ;;  %v20_v20 = vld [vmem:[%s389_s0 + $0x30] sm:$0xff] }
   0x6   :  { %246 = vmatprep.subr.bf16.mxu0 %v245_v5  ;;  %262 = vmatprep.subr.bf16.mxu1 %v245_v5  ;;  %v257_v16 = vpack.c.bf16 %v31_v15, %v30_v14  ;;  %v19_v18 = vld [vmem:[%s389_s0 + $0x28] sm:$0xff]  ;;  %v17_v21 = vld [vmem:[%s389_s0 + $0x18] sm:$0xff]  ;;  %v182_v23 = vld [vmem:[%s390_s2] ss:$0 sm:$0xff] }
   0x7   :  { %229 = vmatprep.mubr.msk.f32.mxu0 %vm39_vm0, %v14_v8  ;;  %235 = vmatprep.mubr.msk.f32.mxu1 %vm39_vm0, %v18_v9  ;;  %v21_v22 = vld [vmem:[%s389_s0 + $0x38] sm:$0xff] }
   0x9   :  { %248 = vmatpush3.bf16.msra.mxu0 %v245_v5  ;;  %267 = vmatpush3.bf16.msra.mxu1 %v245_v5 }
   0xa   :  { %250 = vmatprep.subr.bf16.mxu0 %v249_v10  ;;  %263 = vmatprep.subr.bf16.mxu1 %v249_v10 }
   0xd   :  { %252 = vmatpush3.bf16.msra.mxu0 %v249_v10  ;;  %268 = vmatpush3.bf16.msra.mxu1 %v249_v10 }
   0xe   :  { %254 = vmatprep.subr.bf16.mxu0 %v253_v13  ;;  %264 = vmatprep.subr.bf16.mxu1 %v253_v13 }
  0x11   :  { %256 = vmatpush3.bf16.msra.mxu0 %v253_v13  ;;  %269 = vmatpush3.bf16.msra.mxu1 %v253_v13 }
  0x12   :  { %258 = vmatprep.subr.bf16.mxu0 %v257_v16  ;;  %265 = vmatprep.subr.bf16.mxu1 %v257_v16 }
  0x15   :  { %260 = vmatpush3.bf16.msra.mxu0 %v257_v16  ;;  %270 = vmatpush3.bf16.msra.mxu1 %v257_v16 }
  0x18   :  { %230 = vmatmul.mubr.msk.f32.vlgmr.msra.gmra.mrb[0].mxu0 %vm39_vm0, %v15_v17  ;;  %236 = vmatmul.mubr.msk.f32.vlgmr.msra.gmra.mrb[0].mxu1 %vm39_vm0, %v19_v18 }
  0x19   :  { %232 = vmatprep.mubr.msk.f32.mxu0 %vm39_vm0, %v16_v19  ;;  %238 = vmatprep.mubr.msk.f32.mxu1 %vm39_vm0, %v20_v20 }
  0x1c   :  { %233 = vmatmul.mubr.msk.f32.gmra.mrb[2].mxu0 %vm39_vm0, %v17_v21  ;;  %239 = vmatmul.mubr.msk.f32.gmra.mrb[2].mxu1 %vm39_vm0, %v21_v22 }
  0xeb   :  { %v231_v24 = vpop.f32.mrb[0].mxu0  ;;  %v237_v25 = vpop.f32.mrb[0].mxu1 }
  0xec   :  { %v136_v26 = vadd.f32 %v231_v24, %v182_v23  ;;  %v156_v27 = vadd.f32 %v237_v25, %v182_v23  ;;  %v130_v28 = vpop.f32.mrb[1].mxu0  ;;  %v150_v29 = vpop.f32.mrb[1].mxu1 }
  0xed   :  { %v131_v30 = vadd.f32 %v182_v23, %v130_v28  ;;  %v151_v31 = vadd.f32 %v182_v23, %v150_v29 }
  0xee   :  { %171 = vst.msk [vmem:[%s391_s3 + $0x8] sm:$0xff] %vm169_vm1, %v136_v26  ;;  %175 = vst.msk [vmem:[%s391_s3 + $0x28] sm:$0xff] %vm169_vm1, %v156_v27 }
  0xef   :  { %170 = vst.msk [vmem:[%s391_s3] sm:$0xff] %vm169_vm1, %v131_v30  ;;  %174 = vst.msk [vmem:[%s391_s3 + $0x20] sm:$0xff] %vm169_vm1, %v151_v31  ;;  %v234_v32 = vpop.f32.mrb[2].mxu0  ;;  %v240_v33 = vpop.f32.mrb[2].mxu1 }
  0xf0   :  { %v146_v34 = vadd.f32 %v234_v32, %v182_v23  ;;  %v166_v35 = vadd.f32 %v240_v33, %v182_v23  ;;  %v140_v36 = vpop.f32.mrb[3].mxu0  ;;  %v160_v37 = vpop.f32.mrb[3].mxu1 }
  0xf1   :  { %v141_v38 = vadd.f32 %v182_v23, %v140_v36  ;;  %v161_v39 = vadd.f32 %v182_v23, %v160_v37 }
  0xf2   :  { %173 = vst.msk [vmem:[%s391_s3 + $0x18] sm:$0xff] %vm169_vm1, %v146_v34  ;;  %177 = vst.msk [vmem:[%s391_s3 + $0x38] sm:$0xff] %vm169_vm1, %v166_v35 }
  0xf3   :  { %172 = vst.msk [vmem:[%s391_s3 + $0x10] sm:$0xff] %vm169_vm1, %v141_v38  ;;  %176 = vst.msk [vmem:[%s391_s3 + $0x30] sm:$0xff] %vm169_vm1, %v161_v39 }

</bundles_post_ra>
